<compile_context>
chip_gen: v5e
topology: v5e:2x2
jax: 0.10.0
libtpu: 0.0.40
codegen_flags: <defaults>
</compile_context>

<pallas_src>
import functools

import numpy as np
import jax
import jax.numpy as jnp
from jax import lax
from jax.experimental import pallas as pl
from jax.experimental.pallas import tpu as pltpu


# --------------------------------------------------------------------------- #
# Kernel
# --------------------------------------------------------------------------- #
def _focal_kernel(x_ref, t_ref, seg_ref, out_ref, *,
                  alpha, gamma, sp_weight, num_classes, n_valid,
                  tile_rows, steps_per_chunk, max_in_input_dtype):
    ci = pl.program_id(0)          # parallel chunk axis (megacore-shardable)
    si = pl.program_id(1)          # sequential reduction axis within a chunk

    @pl.when(si == 0)
    def _():
        out_ref[...] = jnp.zeros_like(out_ref)

    k = t_ref.shape[-1]            # packed rows per physical row
    c = num_classes

    xr = x_ref[...]                # (tile_rows, k*C), input dtype (bf16/f32)

    # Row max over all k*C packed lanes.  On v6e/v7x the reduce runs in the
    # input dtype (bf16 max is exact, half the vregs); v5e keeps the f32 path.
    # NOTE: this is >= every per-segment max, so exp() never overflows; it only
    # loses accuracy if logits of adjacent rows differ by ~>80, which does not
    # happen for real model logits.
    # TODO(synk): exact per-segment max (roll-based bit-trick) if extreme
    # per-row logit spreads ever matter.
    if max_in_input_dtype:
        m = jnp.max(xr, axis=-1, keepdims=True).astype(jnp.float32)
    else:
        m = jnp.max(xr.astype(jnp.float32), axis=-1, keepdims=True)

    sx = xr.astype(jnp.float32) - m                    # (tile_rows, k*C), <= 0
    ex = jnp.exp(sx)                                   # EUP on lane-dense vregs

    seg = seg_ref[...]                                 # (k*C, k) block-diag 0/1 f32

    def segsum(v):
        # Segment sum via MXU matmul.  Split into bf16-exact hi/lo parts so the
        # result stays f32-accurate no matter the MXU's f32 pass decomposition.
        hi = v.astype(jnp.bfloat16).astype(jnp.float32)
        lo = v - hi
        return (jnp.dot(hi, seg, preferred_element_type=jnp.float32) +
                jnp.dot(lo, seg, preferred_element_type=jnp.float32))

    sexp = segsum(ex)                                  # (tile_rows, k)

    # Per-segment target gather: select the target lane of each segment with an
    # iota compare (k-way unrolled lane broadcast of the target column), then
    # segment-sum the single surviving element per segment.
    col = lax.broadcasted_iota(jnp.int32, sx.shape, 1)
    t = t_ref[...]                                     # (tile_rows, k) int32 in [0, C)
    picked = jnp.zeros_like(sx)
    for j in range(k):
        tj = t[:, j:j + 1] + j * c                     # flat target lane of segment j
        picked = jnp.where(col == tj, sx, picked)
    gathered = segsum(picked)                          # (tile_rows, k): x_t - m

    bce = jnp.log(sexp) - gathered                     # per-row cross entropy, >= 0

    # Focal term; avoid pow() on the hot (integer-gamma) paths.
    pt = jnp.exp(-bce)
    q = 1.0 - pt
    if gamma == 2.0:
        focal = q * q
    elif gamma == 1.0:
        focal = q
    elif gamma == 0.0:
        focal = jnp.ones_like(q)
    elif float(gamma).is_integer() and 0.0 < gamma <= 16.0:
        focal = q ** int(gamma)                        # integer_pow -> VPU multiplies
    else:
        focal = q ** jnp.float32(gamma)                # generic pow (EUP exp/log)

    # alpha folded into the class-0 re-weighting (one select + one mul saved).
    w = jnp.where(t == 0, jnp.float32(alpha * sp_weight), jnp.float32(alpha))

    # Ragged-tail / clamped-duplicate masking MUST be a select (not a multiply)
    # so NaN/Inf produced from garbage padded rows never reach the accumulator.
    block_idx = ci * steps_per_chunk + si              # unclamped logical block id
    row_ids = block_idx * tile_rows + lax.broadcasted_iota(
        jnp.int32, (tile_rows, 1), 0)
    valid = row_ids < n_valid

    out_ref[...] += jnp.where(valid, w * focal * bce, 0.0)


# --------------------------------------------------------------------------- #
# Wrapper helpers
# --------------------------------------------------------------------------- #
def _vmem_capacity_bytes():
    try:
        cap = int(getattr(pltpu.get_tpu_info(), "vmem_capacity_bytes", 0))
        if cap > 0:
            return cap
    except Exception:
        pass
    return 64 * 1024 * 1024          # conservative: smallest per-TC VMEM (v7x)


def _device_kind():
    try:
        return jax.devices()[0].device_kind.lower()
    except Exception:
        return ""


def _default_num_chunks():
    # 2-TC parts (v4/v5p megacore, v7x) can shard the "parallel" chunk axis
    # across TensorCores; single-TC parts (v5e/v6e) get 1 chunk so no clamped
    # duplicate block is ever re-read.
    return 2 if any(t in _device_kind() for t in ("v4", "v5p", "v7")) else 1


def _focal_sum_ref(logits, targets, alpha, gamma, sp_weight):
    # Plain-JAX sum (not mean) used for the <k-row ragged remainder / tiny N.
    logp = jax.nn.log_softmax(logits.astype(jnp.float32), axis=-1)
    bce = -jnp.take_along_axis(logp, targets[:, None].astype(jnp.int32), axis=-1)[:, 0]
    pt = jnp.exp(-bce)
    f = jnp.float32(alpha) * (1.0 - pt) ** jnp.float32(gamma) * bce
    w = jnp.where(targets == 0, jnp.float32(sp_weight), jnp.float32(1.0))
    return jnp.sum(f * w)


# --------------------------------------------------------------------------- #
# Public entry point
# --------------------------------------------------------------------------- #
def weighted_focal_loss(logits, targets, *, alpha=0.25, gamma=2.0, sp_weight=1.0,
                        tile_rows=None, num_chunks=None):
    """logits: (N, C) f32/bf16; targets: (N,) int. Returns scalar f32 loss."""
    n, c = logits.shape
    if logits.dtype not in (jnp.float32, jnp.bfloat16):
        logits = logits.astype(jnp.float32)
    targets = targets.astype(jnp.int32)

    # Lane-packing factor: k logical rows per physical kernel row (k*C ~ 128).
    k = max(1, 128 // c) if c <= 64 else 1
    k = min(k, 32, max(1, n // 8))
    main_n = (n // k) * k
    n_packed = main_n // k
    if n_packed < 8:                 # tiny batch: not worth a kernel launch
        main_n, n_packed = 0, 0

    total = jnp.float32(0.0)

    if n_packed > 0:
        w_lanes = k * c
        # Row-major merge of k adjacent rows into the lane axis: layout-only.
        lg = logits[:main_n].reshape(n_packed, w_lanes)
        tg = targets[:main_n].reshape(n_packed, k)
        # Block-diagonal 0/1 matrix used for the MXU segment sums.
        segsum = jnp.asarray(
            (np.arange(w_lanes)[:, None] // c == np.arange(k)[None, :]
             ).astype(np.float32))

        # --- tile sizing: account for input double-buffer + f32 intermediates.
        in_bytes = jnp.dtype(logits.dtype).itemsize
        cap = _vmem_capacity_bytes()
        budget = min(cap // 3, 40 * 1024 * 1024)
        if tile_rows is None:
            per_row = w_lanes * (2 * in_bytes + 6 * 4) + k * 48
            tile_rows = budget // max(per_row, 1)
        tile_rows = max(8, (int(tile_rows) // 8) * 8)
        tile_rows = min(tile_rows, max(8, (n_packed // 8) * 8))

        steps_total = pl.cdiv(n_packed, tile_rows)
        if num_chunks is None:
            num_chunks = _default_num_chunks()
        num_chunks = max(1, min(int(num_chunks), int(steps_total)))
        steps_per_chunk = pl.cdiv(steps_total, num_chunks)
        last_block = steps_total - 1

        def row_map(ci, si):
            # Clamp so padded (chunk, step) pairs re-read the last real block;
            # the in-kernel unclamped row mask zeroes their contribution.
            return (jnp.minimum(ci * steps_per_chunk + si, last_block), 0)

        bf16_max = (logits.dtype == jnp.bfloat16) and any(
            t in _device_kind() for t in ("v6", "v7"))

        kernel = functools.partial(
            _focal_kernel, alpha=float(alpha), gamma=float(gamma),
            sp_weight=float(sp_weight), num_classes=int(c),
            n_valid=int(n_packed), tile_rows=int(tile_rows),
            steps_per_chunk=int(steps_per_chunk),
            max_in_input_dtype=bool(bf16_max))

        vlim = int(min(cap - (8 << 20), max(2 * budget, 32 << 20)))

        # TODO(synk): on v7x, confirm the "parallel" axis shards across both
        # TensorCores; if not, switch to pltpu.CORE_PARALLEL / core_map.
        partials = pl.pallas_call(
            kernel,
            out_shape=jax.ShapeDtypeStruct((num_chunks * tile_rows, k),
                                           jnp.float32),
            grid_spec=pltpu.PrefetchScalarGridSpec(
                num_scalar_prefetch=0,
                grid=(num_chunks, steps_per_chunk),
                in_specs=[
                    pl.BlockSpec((tile_rows, w_lanes), row_map),
                    pl.BlockSpec((tile_rows, k), row_map),
                    pl.BlockSpec((w_lanes, k), lambda ci, si: (0, 0)),
                ],
                out_specs=pl.BlockSpec((tile_rows, k), lambda ci, si: (ci, 0)),
            ),
            compiler_params=pltpu.CompilerParams(
                dimension_semantics=("parallel", "arbitrary"),
                vmem_limit_bytes=vlim),
        )(lg, tg, segsum)

        total = total + jnp.sum(partials)

    rem = n - main_n
    if rem > 0:
        # Ragged remainder (< k rows) or tiny batches: negligible, plain JAX.
        # TODO(synk): when rem > 0 the leading slice may force one extra copy
        # of the main logits; a k=1 epilogue kernel would avoid it.
        total = total + _focal_sum_ref(logits[main_n:], targets[main_n:],
                                       alpha, gamma, sp_weight)

    return total / jnp.float32(n)


# --------------------------------------------------------------------------- #
# Pure-JAX reference (mirrors the PyTorch module) and demo
# --------------------------------------------------------------------------- #
def _reference(logits, targets, alpha=0.25, gamma=2.0, sp_weight=1.0):
    logp = jax.nn.log_softmax(logits.astype(jnp.float32), axis=-1)
    bce = -jnp.take_along_axis(logp, targets[:, None].astype(jnp.int32), axis=-1)[:, 0]
    pt = jnp.exp(-bce)
    f_loss = alpha * (1.0 - pt) ** gamma * bce
    w = jnp.where(targets == 0, sp_weight, 1.0)
    return jnp.mean(f_loss * w)


if __name__ == "__main__":
    key = jax.random.PRNGKey(0)
    k1, k2, k3, k4, k5, k6 = jax.random.split(key, 6)

    # Tolerance allows for MXU f32 pass-decomposition in the segment-sum dots.
    RTOL, ATOL = 2e-3, 1e-6

    # Case 1: small f32 batch -> lane packing k=2, single block, single chunk.
    n1, c1 = 16, 32
    lg1 = jax.random.normal(k1, (n1, c1), dtype=jnp.float32)
    tg1 = jax.random.randint(k2, (n1,), 0, c1, dtype=jnp.int32)
    out1 = jax.block_until_ready(
        weighted_focal_loss(lg1, tg1, alpha=0.25, gamma=2.0, sp_weight=1.5))
    ref1 = _reference(lg1, tg1, 0.25, 2.0, 1.5)
    assert jnp.allclose(out1, ref1, rtol=RTOL, atol=ATOL), (out1, ref1)

    # Case 2: bf16 logits, C=40 -> k=3 (120/128 lanes), ragged packed tail,
    # explicit small tile + 2 chunks to exercise multi-chunk accumulation.
    n2, c2 = 300, 40
    lg2 = jax.random.normal(k3, (n2, c2), dtype=jnp.bfloat16)
    tg2 = jax.random.randint(k4, (n2,), 0, c2, dtype=jnp.int32)
    out2 = jax.block_until_ready(
        weighted_focal_loss(lg2, tg2, alpha=0.5, gamma=2.0, sp_weight=2.0,
                            tile_rows=32, num_chunks=2))
    ref2 = _reference(lg2, tg2, 0.5, 2.0, 2.0)
    assert jnp.allclose(out2, ref2, rtol=RTOL, atol=ATOL), (out2, ref2)

    # Case 3: N not divisible by the packing factor -> JAX epilogue for the
    # remainder row; auto tile / auto chunking.
    n3, c3 = 205, 48
    lg3 = jax.random.normal(k5, (n3, c3), dtype=jnp.float32)
    tg3 = jax.random.randint(k6, (n3,), 0, c3, dtype=jnp.int32)
    out3 = jax.block_until_ready(weighted_focal_loss(lg3, tg3))
    ref3 = _reference(lg3, tg3)
    assert jnp.allclose(out3, ref3, rtol=RTOL, atol=ATOL), (out3, ref3)

    print("KERNEL_OK")
</pallas_src>

<mosaic_0001>
module attributes {stable_mosaic.version = 11 : i64} {
  func.func @_focal_kernel(%arg0: i32, %arg1: i32, %arg2: memref<8x64xf32, #tpu.memory_space<vmem>>, %arg3: memref<8x2xi32, #tpu.memory_space<vmem>>, %arg4: memref<64x2xf32, #tpu.memory_space<vmem>>, %arg5: memref<8x2xf32, #tpu.memory_space<vmem>>) attributes {dimension_semantics = [#tpu.dimension_semantics<parallel>, #tpu.dimension_semantics<arbitrary>], iteration_bounds = array<i64: 1, 1>, scalar_prefetch = 0 : i64, scratch_operands = 0 : i64, tpu.core_type = #tpu.core_type<tc>, window_params = [{transform_indices = @transform_0, window_bounds = array<i64: 8, 64>}, {transform_indices = @transform_1, window_bounds = array<i64: 8, 2>}, {pipeline_mode = #tpu.pipeline_mode<synchronous>, transform_indices = @transform_2, window_bounds = array<i64: 64, 2>}, {transform_indices = @transform_3, window_bounds = array<i64: 8, 2>}]} {
    %c0_i32 = arith.constant 0 : i32
    %0 = arith.cmpi eq, %arg1, %c0_i32 : i32
    %1 = arith.extui %0 : i1 to i32
    %c0_i32_0 = arith.constant 0 : i32
    %2 = arith.cmpi ne, %1, %c0_i32_0 : i32
    scf.if %2 {
      %cst_23 = arith.constant 0.000000e+00 : f32
      %67 = vector.broadcast %cst_23 : f32 to vector<8x2xf32>
      %c0_24 = arith.constant 0 : index
      %c0_25 = arith.constant 0 : index
      %68 = vector.load %arg5[%c0_24, %c0_25] : memref<8x2xf32, #tpu.memory_space<vmem>>, vector<8x2xf32>
      tpu.vector_store %arg5[%c0_24, %c0_25], %67 {strides = array<i32>} : memref<8x2xf32, #tpu.memory_space<vmem>>, vector<8x2xf32>,
    } else {
    }
    %c0 = arith.constant 0 : index
    %c0_1 = arith.constant 0 : index
    %3 = vector.load %arg2[%c0, %c0_1] : memref<8x64xf32, #tpu.memory_space<vmem>>, vector<8x64xf32>
    %cst = arith.constant dense<0xFF800000> : vector<8xf32>
    %4 = vector.multi_reduction <maximumf>, %3, %cst [1] : vector<8x64xf32> to vector<8xf32>
    %5 = vector.shape_cast %4 : vector<8xf32> to vector<8x1xf32>
    %6 = vector.broadcast %5 : vector<8x1xf32> to vector<8x64xf32>
    %7 = arith.subf %3, %6 : vector<8x64xf32>
    %8 = math.exp %7 : vector<8x64xf32>
    %c0_2 = arith.constant 0 : index
    %c0_3 = arith.constant 0 : index
    %9 = vector.load %arg4[%c0_2, %c0_3] : memref<64x2xf32, #tpu.memory_space<vmem>>, vector<64x2xf32>
    %10 = arith.truncf %8 : vector<8x64xf32> to vector<8x64xbf16>
    %11 = arith.extf %10 : vector<8x64xbf16> to vector<8x64xf32>
    %12 = arith.subf %8, %11 : vector<8x64xf32>
    %cst_4 = arith.constant dense<0.000000e+00> : vector<8x2xf32>
    %13 = tpu.matmul %11, %9, %cst_4 {dimension_numbers = #tpu.dot_dimension_numbers<[1], [0], [0], [1], [0, 0, 1, 1], [], []>} : vector<8x64xf32>, vector<64x2xf32>, vector<8x2xf32> -> vector<8x2xf32>
    %cst_5 = arith.constant dense<0.000000e+00> : vector<8x2xf32>
    %14 = tpu.matmul %12, %9, %cst_5 {dimension_numbers = #tpu.dot_dimension_numbers<[1], [0], [0], [1], [0, 0, 1, 1], [], []>} : vector<8x64xf32>, vector<64x2xf32>, vector<8x2xf32> -> vector<8x2xf32>
    %15 = arith.addf %13, %14 : vector<8x2xf32>
    %16 = tpu.iota {dimensions = array<i32: 1>} : vector<8x64xi32>
    %c0_6 = arith.constant 0 : index
    %c0_7 = arith.constant 0 : index
    %17 = vector.load %arg3[%c0_6, %c0_7] : memref<8x2xi32, #tpu.memory_space<vmem>>, vector<8x2xi32>
    %cst_8 = arith.constant 0.000000e+00 : f32
    %18 = vector.broadcast %cst_8 : f32 to vector<8x64xf32>
    %19 = vector.extract_strided_slice %17 {offsets = [0, 0], sizes = [8, 1], strides = [1, 1]} : vector<8x2xi32> to vector<8x1xi32>
    %c0_i32_9 = arith.constant 0 : i32
    %20 = vector.broadcast %c0_i32_9 : i32 to vector<8x1xi32>
    %21 = arith.addi %19, %20 : vector<8x1xi32>
    %22 = vector.broadcast %21 : vector<8x1xi32> to vector<8x64xi32>
    %23 = arith.cmpi eq, %16, %22 : vector<8x64xi32>
    %24 = arith.select %23, %7, %18 : vector<8x64xi1>, vector<8x64xf32>
    %25 = vector.extract_strided_slice %17 {offsets = [0, 1], sizes = [8, 1], strides = [1, 1]} : vector<8x2xi32> to vector<8x1xi32>
    %c32_i32 = arith.constant 32 : i32
    %26 = vector.broadcast %c32_i32 : i32 to vector<8x1xi32>
    %27 = arith.addi %25, %26 : vector<8x1xi32>
    %28 = vector.broadcast %27 : vector<8x1xi32> to vector<8x64xi32>
    %29 = arith.cmpi eq, %16, %28 : vector<8x64xi32>
    %30 = arith.select %29, %7, %24 : vector<8x64xi1>, vector<8x64xf32>
    %31 = arith.truncf %30 : vector<8x64xf32> to vector<8x64xbf16>
    %32 = arith.extf %31 : vector<8x64xbf16> to vector<8x64xf32>
    %33 = arith.subf %30, %32 : vector<8x64xf32>
    %cst_10 = arith.constant dense<0.000000e+00> : vector<8x2xf32>
    %34 = tpu.matmul %32, %9, %cst_10 {dimension_numbers = #tpu.dot_dimension_numbers<[1], [0], [0], [1], [0, 0, 1, 1], [], []>} : vector<8x64xf32>, vector<64x2xf32>, vector<8x2xf32> -> vector<8x2xf32>
    %cst_11 = arith.constant dense<0.000000e+00> : vector<8x2xf32>
    %35 = tpu.matmul %33, %9, %cst_11 {dimension_numbers = #tpu.dot_dimension_numbers<[1], [0], [0], [1], [0, 0, 1, 1], [], []>} : vector<8x64xf32>, vector<64x2xf32>, vector<8x2xf32> -> vector<8x2xf32>
    %36 = arith.addf %34, %35 : vector<8x2xf32>
    %37 = math.log %15 : vector<8x2xf32>
    %38 = arith.subf %37, %36 : vector<8x2xf32>
    %cst_12 = arith.constant 0.000000e+00 : f32
    %39 = vector.broadcast %cst_12 : f32 to vector<8x2xf32>
    %40 = arith.subf %39, %38 : vector<8x2xf32>
    %41 = math.exp %40 : vector<8x2xf32>
    %cst_13 = arith.constant 1.000000e+00 : f32
    %42 = vector.broadcast %cst_13 : f32 to vector<8x2xf32>
    %43 = arith.subf %42, %41 : vector<8x2xf32>
    %44 = arith.mulf %43, %43 : vector<8x2xf32>
    %c0_i32_14 = arith.constant 0 : i32
    %45 = vector.broadcast %c0_i32_14 : i32 to vector<8x2xi32>
    %46 = arith.cmpi eq, %17, %45 : vector<8x2xi32>
    %cst_15 = arith.constant 3.750000e-01 : f32
    %cst_16 = arith.constant 2.500000e-01 : f32
    %47 = vector.broadcast %cst_15 : f32 to vector<8x2xf32>
    %48 = vector.broadcast %cst_16 : f32 to vector<8x2xf32>
    %49 = arith.select %46, %47, %48 : vector<8x2xi1>, vector<8x2xf32>
    %c1_i32 = arith.constant 1 : i32
    %50 = arith.muli %arg0, %c1_i32 : i32
    %51 = arith.addi %50, %arg1 : i32
    %c8_i32 = arith.constant 8 : i32
    %52 = arith.muli %51, %c8_i32 : i32
    %53 = tpu.iota {dimensions = array<i32: 0>} : vector<8x1xi32>
    %54 = vector.broadcast %52 : i32 to vector<8x1xi32>
    %55 = arith.addi %54, %53 : vector<8x1xi32>
    %c8_i32_17 = arith.constant 8 : i32
    %56 = vector.broadcast %c8_i32_17 : i32 to vector<8x1xi32>
    %57 = arith.cmpi slt, %55, %56 : vector<8x1xi32>
    %c0_18 = arith.constant 0 : index
    %c0_19 = arith.constant 0 : index
    %58 = vector.load %arg5[%c0_18, %c0_19] : memref<8x2xf32, #tpu.memory_space<vmem>>, vector<8x2xf32>
    %59 = arith.mulf %49, %44 : vector<8x2xf32>
    %60 = arith.mulf %59, %38 : vector<8x2xf32>
    %cst_20 = arith.constant 0.000000e+00 : f32
    %61 = vector.shape_cast %57 : vector<8x1xi1> to vector<8x1xi1>
    %62 = vector.broadcast %61 : vector<8x1xi1> to vector<8x2xi1>
    %63 = vector.broadcast %cst_20 : f32 to vector<8x2xf32>
    %64 = arith.select %62, %60, %63 : vector<8x2xi1>, vector<8x2xf32>
    %65 = arith.addf %58, %64 : vector<8x2xf32>
    %c0_21 = arith.constant 0 : index
    %c0_22 = arith.constant 0 : index
    %66 = vector.load %arg5[%c0_21, %c0_22] : memref<8x2xf32, #tpu.memory_space<vmem>>, vector<8x2xf32>
    tpu.vector_store %arg5[%c0_21, %c0_22], %65 {strides = array<i32>} : memref<8x2xf32, #tpu.memory_space<vmem>>, vector<8x2xf32>,
    return
  }
  func.func @transform_0(%arg0: i32, %arg1: i32) -> (i32, i32) {
    %c1_i32 = arith.constant 1 : i32
    %0 = arith.muli %arg0, %c1_i32 : i32
    %1 = arith.addi %0, %arg1 : i32
    %c0_i32 = arith.constant 0 : i32
    %2 = arith.minsi %1, %c0_i32 : i32
    %c0_i32_0 = arith.constant 0 : i32
    %c0_i32_1 = arith.constant 0 : i32
    return %2, %c0_i32_0 : i32, i32
  }
  func.func @transform_1(%arg0: i32, %arg1: i32) -> (i32, i32) {
    %c1_i32 = arith.constant 1 : i32
    %0 = arith.muli %arg0, %c1_i32 : i32
    %1 = arith.addi %0, %arg1 : i32
    %c0_i32 = arith.constant 0 : i32
    %2 = arith.minsi %1, %c0_i32 : i32
    %c0_i32_0 = arith.constant 0 : i32
    %c0_i32_1 = arith.constant 0 : i32
    return %2, %c0_i32_0 : i32, i32
  }
  func.func @transform_2(%arg0: i32, %arg1: i32) -> (i32, i32) {
    %c0_i32 = arith.constant 0 : i32
    %c0_i32_0 = arith.constant 0 : i32
    %c0_i32_1 = arith.constant 0 : i32
    return %c0_i32, %c0_i32_0 : i32, i32
  }
  func.func @transform_3(%arg0: i32, %arg1: i32) -> (i32, i32) {
    %c0_i32 = arith.constant 0 : i32
    %c0_i32_0 = arith.constant 0 : i32
    return %arg0, %c0_i32 : i32, i32
  }
}

</mosaic_0001>

<bundles_post_ra>
// kernel: tpu_custom_call.1
= control target key start
LH: loop header
LB: loop body
LE: loop exit
PB: predicated region body
PF: predicated region fallthrough
CT: control target
= control target key end

     0   :  { %vm75_vm0 = vcmask 523264   ;;  %v261_v1 = vmov 0   ;;  %v262_v2 = vmov 1   ;;  %v139_v18 = vlaneseq  ;;  %s336_s0 = inlined_call_operand.vmem [shape: f32[8,64], index: 0, kind: input, shape index: {}]   ;;  %s337_s1 = inlined_call_operand.vmem [shape: s32[8,2], index: 1, kind: input, shape index: {}]   ;;  %s338_s2 = inlined_call_operand.vmem [shape: f32[64,2], index: 2, kind: input, shape index: {}]   ;;  %s339_s3 = inlined_call_operand.vmem [shape: f32[8,2], index: 3, kind: output, shape index: {}]  }
   0x1   :  { %v74_v0 = vld [vmem:[%s336_s0] sm:$0xff]  ;;  %252 = vset.pattern.permute.xlu0 %v261_v1  ;;  %253 = vset.pattern.permute.xlu1 %v262_v2  ;;  %v89_v6 = vld [vmem:[%s338_s2 + $0x38] sm:$0xff]  ;;  %v88_v7 = vld [vmem:[%s338_s2 + $0x30] sm:$0xff]  ;;  %vm72_vm3 = vcmask 15360   ;;  %v263_v30 = vmov 0.0   ;;  %v264_v44 = vmov 0.25  }
   0x2   :  { %v291_v3 = vld [vmem:[%s337_s1] sm:$0xff]  ;;  %v76_v4 = vsel %vm75_vm0, %v74_v0, -inf  ;;  %127 = vmatpush.msra.mxu1 %v89_v6  ;;  %104 = vmatpush.msra.mxu0 %v89_v6  ;;  %v87_v8 = vld [vmem:[%s338_s2 + $0x28] sm:$0xff]  ;;  %v85_v10 = vld [vmem:[%s338_s2 + $0x18] sm:$0xff]  ;;  %v140_v21 = vand.u32 127, %v139_v18  ;;  %73 = vst.msk [vmem:[%s339_s3] sm:$0xff] %vm72_vm3, %v263_v30 }
   0x3   :  { %v147_v5 = vadd.s32 32, %v291_v3  ;;  %77 = vmax.xlane.f32.xlu0 %v76_v4  ;;  %190 = vmatpush.msra.mxu3 %v89_v6  ;;  %v86_v9 = vld [vmem:[%s338_s2 + $0x20] sm:$0xff]  ;;  %v84_v11 = vld [vmem:[%s338_s2 + $0x10] sm:$0xff]  ;;  %v83_v12 = vld [vmem:[%s338_s2 + $0x8] sm:$0xff]  ;;  %vm210_vm4 = vcmp.eq.s32.totalorder %v291_v3, 0 }
   0x4   :  { %167 = vmatpush.msra.mxu2 %v89_v6  ;;  %128 = vmatpush.msra.mxu1 %v88_v7  ;;  %v82_v13 = vld [vmem:[%s338_s2] sm:$0xff]  ;;  %v211_v45 = vsel %vm210_vm4, 0.375, %v264_v44 }
   0x5   :  { %149 = vperm.xlu1 %253, %v147_v5   ;;  %105 = vmatpush.msra.mxu0 %v88_v7 }
   0x6   :  { %191 = vmatpush.msra.mxu3 %v88_v7  ;;  %168 = vmatpush.msra.mxu2 %v88_v7 }
   0x7   :  { %129 = vmatpush.msra.mxu1 %v87_v8  ;;  %106 = vmatpush.msra.mxu0 %v87_v8 }
   0x8   :  { %192 = vmatpush.msra.mxu3 %v87_v8  ;;  %169 = vmatpush.msra.mxu2 %v87_v8 }
   0x9   :  { %130 = vmatpush.msra.mxu1 %v86_v9  ;;  %107 = vmatpush.msra.mxu0 %v86_v9  ;;  %v219_v48 = vld [vmem:[%s339_s3] sm:$0xff] }
   0xa   :  { %193 = vmatpush.msra.mxu3 %v86_v9  ;;  %170 = vmatpush.msra.mxu2 %v86_v9 }
   0xb   :  { %131 = vmatpush.msra.mxu1 %v85_v10  ;;  %108 = vmatpush.msra.mxu0 %v85_v10 }
   0xc   :  { %194 = vmatpush.msra.mxu3 %v85_v10  ;;  %171 = vmatpush.msra.mxu2 %v85_v10 }
   0xd   :  { %132 = vmatpush.msra.mxu1 %v84_v11  ;;  %109 = vmatpush.msra.mxu0 %v84_v11 }
   0xe   :  { %195 = vmatpush.msra.mxu3 %v84_v11  ;;  %172 = vmatpush.msra.mxu2 %v84_v11 }
   0xf   :  { %133 = vmatpush.msra.mxu1 %v83_v12  ;;  %110 = vmatpush.msra.mxu0 %v83_v12 }
  0x10   :  { %196 = vmatpush.msra.mxu3 %v83_v12  ;;  %173 = vmatpush.msra.mxu2 %v83_v12 }
  0x11   :  { %134 = vmatpush.msra.mxu1 %v82_v13  ;;  %111 = vmatpush.msra.mxu0 %v82_v13 }
  0x12   :  { %197 = vmatpush.msra.mxu3 %v82_v13  ;;  %174 = vmatpush.msra.mxu2 %v82_v13 }
  0x17   :  { %143 = vperm.xlu0 %252, %v291_v3  }
  0x1f   :  { %254 = vset.pattern.permute.xlu0 %v262_v2 }
  0x76   :  { %v78_v14 = vpop.xlane.xlu0 %77 }
  0x77   :  { %v79_v15 = vsub.f32 %v74_v0, %v78_v14  ;;  %v150_v23 = vpop.permute.xlu1 %149 }
  0x78   :  { %vm151_vm1 = vcmp.eq.s32.totalorder %v140_v21, %v150_v23 }
  0x79   :  { %v80_v16 = vmul.f32 1.442695, %v79_v15 }
  0x7b   :  { %255 = vpow2.f32 %v80_v16 }
  0x81   :  { %v256_v17 = vpop.eup %255 }
  0x82   :  { %v90_v19 = vpack.c.bf16 %v256_v17, %v256_v17 }
  0x84   :  { %v91_v20 = vunpack.c.l.bf16 %v90_v19 }
  0x86   :  { %245 = vmatmul.msk.f32.vlgmr.msra.gmra.mxu1 %vm75_vm0, %v91_v20  ;;  %v92_v22 = vsub.f32 %v256_v17, %v91_v20 }
  0x88   :  { %244 = vmatmul.msk.f32.vlgmr.msra.gmra.mxu0 %vm75_vm0, %v92_v22 }
  0x89   :  { %v144_v24 = vpop.permute.xlu0 %143 }
  0x8a   :  { %vm145_vm2 = vcmp.eq.s32.totalorder %v140_v21, %v144_v24 }
  0x8b   :  { %v146_v25 = vsel %vm145_vm2, %v79_v15, 0.0 }
  0x8c   :  { %v152_v26 = vsel %vm151_vm1, %v79_v15, %v146_v25 }
  0x8d   :  { %v153_v27 = vpack.c.bf16 %v152_v26, %v152_v26 }
  0x8f   :  { %v154_v28 = vunpack.c.l.bf16 %v153_v27 }
  0x91   :  { %v155_v29 = vsub.f32 %v152_v26, %v154_v28  ;;  %247 = vmatmul.msk.f32.vlgmr.msra.gmra.mxu3 %vm75_vm0, %v154_v28 }
  0x93   :  { %246 = vmatmul.msk.f32.vlgmr.msra.gmra.mxu2 %vm75_vm0, %v155_v29 }
 0x103   :  { %v136_v32 = vpop.f32.mrf.mxu1 }
 0x105   :  { %v113_v31 = vpop.f32.mrf.mxu0 }
 0x106   :  { %v137_v33 = vadd.f32 %v136_v32, %v113_v31 }
 0x108   :  { %257 = vlog2.f32 %v137_v33 }
 0x10e   :  { %v258_v34 = vpop.eup %257 }
 0x10f   :  { %v203_v37 = vmul.f32 0.6931472, %v258_v34 }
 0x114   :  { %v199_v35 = vpop.f32.mrf.mxu3 }
 0x116   :  { %v176_v36 = vpop.f32.mrf.mxu2 }
 0x117   :  { %v200_v38 = vadd.f32 %v199_v35, %v176_v36 }
 0x119   :  { %v204_v39 = vsub.f32 %v203_v37, %v200_v38 }
 0x11b   :  { %v205_v40 = vsub.f32 0.0, %v204_v39 }
 0x11d   :  { %v206_v41 = vmul.f32 1.442695, %v205_v40 }
 0x11f   :  { %259 = vpow2.f32 %v206_v41 }
 0x125   :  { %v260_v42 = vpop.eup %259 }
 0x126   :  { %v208_v43 = vsub.f32 1.0, %v260_v42 }
 0x128   :  { %v209_v46 = vmul.f32 %v208_v43, %v208_v43 }
 0x12a   :  { %v220_v47 = vmul.f32 %v211_v45, %v209_v46 }
 0x12c   :  { %v221_v49 = vmul.f32 %v220_v47, %v204_v39 }
 0x12e   :  { %v225_v50 = vadd.f32 %v221_v49, %v219_v48 }
 0x130   :  { %227 = vst.msk [vmem:[%s339_s3] sm:$0xff] %vm72_vm3, %v225_v50 }

</bundles_post_ra>
